<compile_context>
chip_gen: v7x
topology: tpu7x:2x2x1
jax: 0.10.0
libtpu: 0.0.40
codegen_flags: <defaults>
</compile_context>

<pallas_src>
import functools

import jax
import jax.numpy as jnp
from jax.experimental import pallas as pl
from jax.experimental.pallas import tpu as pltpu


def _mlp_kernel(x_ref, w1_ref, b1_ref, w2_ref, b2_ref, w3_ref, b3_ref, o_ref):
    # fc1 + ReLU  (bf16 operands, f32 accumulate, f32 elementwise)
    x = x_ref[...]
    h1 = jnp.dot(x, w1_ref[...], preferred_element_type=jnp.float32) + b1_ref[...]
    h1 = jnp.maximum(h1, 0.0)
    # fc2 + ReLU
    h2 = (
        jnp.dot(h1.astype(w2_ref.dtype), w2_ref[...],
                preferred_element_type=jnp.float32)
        + b2_ref[...]
    )
    h2 = jnp.maximum(h2, 0.0)
    # fc3 (no activation)
    o = (
        jnp.dot(h2.astype(w3_ref.dtype), w3_ref[...],
                preferred_element_type=jnp.float32)
        + b3_ref[...]
    )
    o_ref[...] = o.astype(o_ref.dtype)


@functools.partial(jax.jit, static_argnames=("block_batch",))
def policy_network_forward(x, w1, b1, w2, b2, w3, b3, *, block_batch=512):
    """x: (N, in) f32; w_i: (in_i, out_i) f32; b_i: (1, out_i) f32 -> (N, out) f32."""
    n, in_dim = x.shape
    fc1 = w1.shape[1]
    fc2 = w2.shape[1]
    out_dim = w3.shape[1]

    # bf16 matmul operands (MXU-native); accumulation stays f32 in-kernel.
    x_bf = x.astype(jnp.bfloat16)
    w1_bf = w1.astype(jnp.bfloat16)
    w2_bf = w2.astype(jnp.bfloat16)
    w3_bf = w3.astype(jnp.bfloat16)

    # Batch tile: large (512) for pipelining / MXU M-fill; for small batches
    # round up to a sublane multiple (8). Pad batch to a tile multiple.
    if n >= block_batch:
        tb = block_batch
    else:
        tb = max(8, ((n + 7) // 8) * 8)
    n_pad = ((n + tb - 1) // tb) * tb
    if n_pad != n:
        x_bf = jnp.pad(x_bf, ((0, n_pad - n), (0, 0)))
    grid = (n_pad // tb,)

    # Weights / biases: constant index_map -> stay resident, no per-step re-DMA.
    const_spec = lambda shape: pl.BlockSpec(shape, lambda i: (0,) * len(shape))

    cost = pl.CostEstimate(
        flops=2 * n_pad * (in_dim * fc1 + fc1 * fc2 + fc2 * out_dim),
        transcendentals=0,
        bytes_accessed=(
            n_pad * in_dim * 2                       # x (bf16)
            + n_pad * out_dim * 4                    # out (f32)
            + (in_dim * fc1 + fc1 * fc2 + fc2 * out_dim) * 2   # weights (bf16)
            + (fc1 + fc2 + out_dim) * 4              # biases (f32)
        ),
    )

    # TODO(synk): output last dim (4) is lane-sparse; a packed lane-dense
    # writeback layout only pays off at very large batch, so it is not done here.
    out_pad = pl.pallas_call(
        _mlp_kernel,
        out_shape=jax.ShapeDtypeStruct((n_pad, out_dim), jnp.float32),
        grid=grid,
        in_specs=[
            pl.BlockSpec((tb, in_dim), lambda i: (i, 0)),
            const_spec(w1_bf.shape), const_spec(b1.shape),
            const_spec(w2_bf.shape), const_spec(b2.shape),
            const_spec(w3_bf.shape), const_spec(b3.shape),
        ],
        out_specs=pl.BlockSpec((tb, out_dim), lambda i: (i, 0)),
        compiler_params=pltpu.CompilerParams(
            dimension_semantics=("parallel",),
        ),
        cost_estimate=cost,
    )(x_bf, w1_bf, b1, w2_bf, b2, w3_bf, b3)

    return out_pad[:n]


def init_linear_params(key, fan_in, fan_out):
    """Deterministic init matching torch.nn.Linear default U(-1/sqrt(fan_in), +)."""
    kw, kb = jax.random.split(key)
    bound = 1.0 / jnp.sqrt(jnp.float32(fan_in))
    # stored as (in, out) so the kernel does x @ W
    w = jax.random.uniform(kw, (fan_in, fan_out), jnp.float32, -bound, bound)
    b = jax.random.uniform(kb, (1, fan_out), jnp.float32, -bound, bound)
    return w, b


def _ref_forward(x, w1, b1, w2, b2, w3, b3):
    """Plain-JAX reference mirroring the kernel's bf16-operand / f32-accum math."""
    q = lambda a: a.astype(jnp.bfloat16).astype(jnp.float32)
    h1 = jnp.maximum(q(x) @ q(w1) + b1, 0.0)
    h2 = jnp.maximum(q(h1) @ q(w2) + b2, 0.0)
    return q(h2) @ q(w3) + b3


if __name__ == "__main__":
    # LunarLander-v2 style sizes: inputShape=(8,), fc1=32, fc2=32, out=4
    in_dim, fc1_size, fc2_size, out_dim = 8, 32, 32, 4

    key = jax.random.PRNGKey(0)
    kx, k1, k2, k3, kx2 = jax.random.split(key, 5)

    w1, b1 = init_linear_params(k1, in_dim, fc1_size)
    w2, b2 = init_linear_params(k2, fc1_size, fc2_size)
    w3, b3 = init_linear_params(k3, fc2_size, out_dim)

    # --- small batch (single grid step, tile rounded up to sublane multiple) ---
    batch = 8
    x = jax.random.normal(kx, (batch, in_dim), jnp.float32)
    out = policy_network_forward(x, w1, b1, w2, b2, w3, b3)
    jax.block_until_ready(out)
    ref = _ref_forward(x, w1, b1, w2, b2, w3, b3)
    assert out.shape == (batch, out_dim)
    assert jnp.allclose(out, ref, atol=1e-2, rtol=1e-2), "small-batch mismatch"

    # --- larger batch exercising the batch grid + padding path ---
    batch2 = 600
    x2 = jax.random.normal(kx2, (batch2, in_dim), jnp.float32)
    out2 = policy_network_forward(x2, w1, b1, w2, b2, w3, b3, block_batch=256)
    jax.block_until_ready(out2)
    ref2 = _ref_forward(x2, w1, b1, w2, b2, w3, b3)
    assert out2.shape == (batch2, out_dim)
    assert jnp.allclose(out2, ref2, atol=1e-2, rtol=1e-2), "gridded-batch mismatch"

    print("KERNEL_OK")
</pallas_src>

<mosaic_0001>
module attributes {stable_mosaic.version = 11 : i64} {
  func.func @_mlp_kernel(%arg0: i32, %arg1: memref<8x8xbf16, #tpu.memory_space<vmem>>, %arg2: memref<8x32xbf16, #tpu.memory_space<vmem>>, %arg3: memref<1x32xf32, #tpu.memory_space<vmem>>, %arg4: memref<32x32xbf16, #tpu.memory_space<vmem>>, %arg5: memref<1x32xf32, #tpu.memory_space<vmem>>, %arg6: memref<32x4xbf16, #tpu.memory_space<vmem>>, %arg7: memref<1x4xf32, #tpu.memory_space<vmem>>, %arg8: memref<8x4xf32, #tpu.memory_space<vmem>>) attributes {dimension_semantics = [#tpu.dimension_semantics<parallel>], iteration_bounds = array<i64: 1>, scalar_prefetch = 0 : i64, scratch_operands = 0 : i64, tpu.core_type = #tpu.core_type<tc>, window_params = [{transform_indices = @transform_0, window_bounds = array<i64: 8, 8>}, {pipeline_mode = #tpu.pipeline_mode<synchronous>, transform_indices = @transform_1, window_bounds = array<i64: 8, 32>}, {pipeline_mode = #tpu.pipeline_mode<synchronous>, transform_indices = @transform_2, window_bounds = array<i64: 1, 32>}, {pipeline_mode = #tpu.pipeline_mode<synchronous>, transform_indices = @transform_3, window_bounds = array<i64: 32, 32>}, {pipeline_mode = #tpu.pipeline_mode<synchronous>, transform_indices = @transform_4, window_bounds = array<i64: 1, 32>}, {pipeline_mode = #tpu.pipeline_mode<synchronous>, transform_indices = @transform_5, window_bounds = array<i64: 32, 4>}, {pipeline_mode = #tpu.pipeline_mode<synchronous>, transform_indices = @transform_6, window_bounds = array<i64: 1, 4>}, {transform_indices = @transform_7, window_bounds = array<i64: 8, 4>}]} {
    %c0 = arith.constant 0 : index
    %c0_0 = arith.constant 0 : index
    %0 = vector.load %arg1[%c0, %c0_0] : memref<8x8xbf16, #tpu.memory_space<vmem>>, vector<8x8xbf16>
    %c0_1 = arith.constant 0 : index
    %c0_2 = arith.constant 0 : index
    %1 = vector.load %arg2[%c0_1, %c0_2] : memref<8x32xbf16, #tpu.memory_space<vmem>>, vector<8x32xbf16>
    %cst = arith.constant dense<0.000000e+00> : vector<8x32xf32>
    %2 = tpu.matmul %0, %1, %cst {dimension_numbers = #tpu.dot_dimension_numbers<[1], [0], [0], [1], [0, 0, 1, 1], [], []>} : vector<8x8xbf16>, vector<8x32xbf16>, vector<8x32xf32> -> vector<8x32xf32>
    %c0_3 = arith.constant 0 : index
    %c0_4 = arith.constant 0 : index
    %3 = vector.load %arg3[%c0_3, %c0_4] : memref<1x32xf32, #tpu.memory_space<vmem>>, vector<1x32xf32>
    %4 = vector.broadcast %3 : vector<1x32xf32> to vector<8x32xf32>
    %5 = arith.addf %2, %4 : vector<8x32xf32>
    %cst_5 = arith.constant 0.000000e+00 : f32
    %6 = vector.broadcast %cst_5 : f32 to vector<8x32xf32>
    %7 = arith.maximumf %5, %6 : vector<8x32xf32>
    %8 = arith.truncf %7 : vector<8x32xf32> to vector<8x32xbf16>
    %c0_6 = arith.constant 0 : index
    %c0_7 = arith.constant 0 : index
    %9 = vector.load %arg4[%c0_6, %c0_7] : memref<32x32xbf16, #tpu.memory_space<vmem>>, vector<32x32xbf16>
    %cst_8 = arith.constant dense<0.000000e+00> : vector<8x32xf32>
    %10 = tpu.matmul %8, %9, %cst_8 {dimension_numbers = #tpu.dot_dimension_numbers<[1], [0], [0], [1], [0, 0, 1, 1], [], []>} : vector<8x32xbf16>, vector<32x32xbf16>, vector<8x32xf32> -> vector<8x32xf32>
    %c0_9 = arith.constant 0 : index
    %c0_10 = arith.constant 0 : index
    %11 = vector.load %arg5[%c0_9, %c0_10] : memref<1x32xf32, #tpu.memory_space<vmem>>, vector<1x32xf32>
    %12 = vector.broadcast %11 : vector<1x32xf32> to vector<8x32xf32>
    %13 = arith.addf %10, %12 : vector<8x32xf32>
    %cst_11 = arith.constant 0.000000e+00 : f32
    %14 = vector.broadcast %cst_11 : f32 to vector<8x32xf32>
    %15 = arith.maximumf %13, %14 : vector<8x32xf32>
    %16 = arith.truncf %15 : vector<8x32xf32> to vector<8x32xbf16>
    %c0_12 = arith.constant 0 : index
    %c0_13 = arith.constant 0 : index
    %17 = vector.load %arg6[%c0_12, %c0_13] : memref<32x4xbf16, #tpu.memory_space<vmem>>, vector<32x4xbf16>
    %cst_14 = arith.constant dense<0.000000e+00> : vector<8x4xf32>
    %18 = tpu.matmul %16, %17, %cst_14 {dimension_numbers = #tpu.dot_dimension_numbers<[1], [0], [0], [1], [0, 0, 1, 1], [], []>} : vector<8x32xbf16>, vector<32x4xbf16>, vector<8x4xf32> -> vector<8x4xf32>
    %c0_15 = arith.constant 0 : index
    %c0_16 = arith.constant 0 : index
    %19 = vector.load %arg7[%c0_15, %c0_16] : memref<1x4xf32, #tpu.memory_space<vmem>>, vector<1x4xf32>
    %20 = vector.broadcast %19 : vector<1x4xf32> to vector<8x4xf32>
    %21 = arith.addf %18, %20 : vector<8x4xf32>
    %c0_17 = arith.constant 0 : index
    %c0_18 = arith.constant 0 : index
    %22 = vector.load %arg8[%c0_17, %c0_18] : memref<8x4xf32, #tpu.memory_space<vmem>>, vector<8x4xf32>
    tpu.vector_store %arg8[%c0_17, %c0_18], %21 {strides = array<i32>} : memref<8x4xf32, #tpu.memory_space<vmem>>, vector<8x4xf32>,
    return
  }
  func.func @transform_0(%arg0: i32) -> (i32, i32) {
    %c0_i32 = arith.constant 0 : i32
    %c0_i32_0 = arith.constant 0 : i32
    return %arg0, %c0_i32 : i32, i32
  }
  func.func @transform_1(%arg0: i32) -> (i32, i32) {
    %c0_i32 = arith.constant 0 : i32
    %c0_i32_0 = arith.constant 0 : i32
    %c0_i32_1 = arith.constant 0 : i32
    return %c0_i32, %c0_i32_0 : i32, i32
  }
  func.func @transform_2(%arg0: i32) -> (i32, i32) {
    %c0_i32 = arith.constant 0 : i32
    %c0_i32_0 = arith.constant 0 : i32
    %c0_i32_1 = arith.constant 0 : i32
    return %c0_i32, %c0_i32_0 : i32, i32
  }
  func.func @transform_3(%arg0: i32) -> (i32, i32) {
    %c0_i32 = arith.constant 0 : i32
    %c0_i32_0 = arith.constant 0 : i32
    %c0_i32_1 = arith.constant 0 : i32
    return %c0_i32, %c0_i32_0 : i32, i32
  }
  func.func @transform_4(%arg0: i32) -> (i32, i32) {
    %c0_i32 = arith.constant 0 : i32
    %c0_i32_0 = arith.constant 0 : i32
    %c0_i32_1 = arith.constant 0 : i32
    return %c0_i32, %c0_i32_0 : i32, i32
  }
  func.func @transform_5(%arg0: i32) -> (i32, i32) {
    %c0_i32 = arith.constant 0 : i32
    %c0_i32_0 = arith.constant 0 : i32
    %c0_i32_1 = arith.constant 0 : i32
    return %c0_i32, %c0_i32_0 : i32, i32
  }
  func.func @transform_6(%arg0: i32) -> (i32, i32) {
    %c0_i32 = arith.constant 0 : i32
    %c0_i32_0 = arith.constant 0 : i32
    %c0_i32_1 = arith.constant 0 : i32
    return %c0_i32, %c0_i32_0 : i32, i32
  }
  func.func @transform_7(%arg0: i32) -> (i32, i32) {
    %c0_i32 = arith.constant 0 : i32
    %c0_i32_0 = arith.constant 0 : i32
    return %arg0, %c0_i32 : i32, i32
  }
}

</mosaic_0001>

<bundles_post_ra>
// kernel: policy_network_forward.1
= control target key start
LH: loop header
LB: loop body
LE: loop exit
PB: predicated region body
PF: predicated region fallthrough
CT: control target
= control target key end

     0   :  { %vm40_vm0 = vcmask 1043456   ;;  %v273_v0 = vmov 0.0   ;;  %vm274_vm1 = vmmov 0   ;;  %vm36_vm2 = vcmask 64512   ;;  %s345_s1 = inlined_call_operand.vmem [shape: bf16[8,32], index: 1, kind: input, shape index: {}]   ;;  %s346_s0 = inlined_call_operand.vmem [shape: bf16[8,8], index: 0, kind: input, shape index: {}]   ;;  %s347_s3 = inlined_call_operand.vmem [shape: bf16[32,32], index: 3, kind: input, shape index: {}]   ;;  %s348_s5 = inlined_call_operand.vmem [shape: bf16[32,4], index: 5, kind: input, shape index: {}]   ;;  %s349_s2 = inlined_call_operand.vmem [shape: f32[1,32], index: 2, kind: input, shape index: {}]   ;;  %s350_s4 = inlined_call_operand.vmem [shape: f32[1,32], index: 4, kind: input, shape index: {}]   ;;  %s351_s6 = inlined_call_operand.vmem [shape: f32[1,4], index: 6, kind: input, shape index: {}]   ;;  %s352_s7 = inlined_call_operand.vmem [shape: f32[8,4], index: 7, kind: output, shape index: {}]  }
   0x1   :  { %245 = vmatprep.subr.bf16.mxu0 %v273_v0  ;;  %v28_v1 = vld [vmem:[%s345_s1] sm:$0xf]  ;;  %247 = vmatprep.mubr.msk.bf16.mxu0 %vm274_vm1, %v273_v0  ;;  %v270_v5 = vld [vmem:[%s347_s3 + $0x8] sm:$0xff]   ;;  %vm109_vm3 = vcmask 261120   ;;  %vm221_vm4 = vcmask 31744  }
   0x2   :  { %v42_v2 = vsel %vm40_vm0, %v28_v1, 0  ;;  %251 = vmatprep.subr.bf16.mxu1 %v273_v0  ;;  %255 = vmatprep.mubr.msk.bf16.mxu1 %vm274_vm1, %v273_v0  ;;  %v27_v3 = vld [vmem:[%s346_s0] sm:$0xf]  ;;  %v272_v15 = vld [vmem:[%s348_s5 + $0x8] sm:$0xff]  }
   0x3   :  { %246 = vmatpush3.bf16.msra.mxu0 %v42_v2  ;;  %v269_v4 = vld [vmem:[%s347_s3] sm:$0xff]  }
   0x4   :  { %259 = vmatprep.subr.bf16.mxu0 %v273_v0  ;;  %252 = vmatpush3.bf16.msra.mxu1 %v269_v4  ;;  %v271_v6 = vld [vmem:[%s348_s5] sm:$0xff]  }
   0x5   :  { %253 = vmatprep.subr.bf16.mxu1 %v273_v0  ;;  %v227_v7 = vld [vmem:[%s349_s2] ss:$0 sm:$0xff] }
   0x6   :  { %248 = vmatmul.mubr.msk.bf16.vlgmr.msra.gmra.mrb[0].mxu0 %vm36_vm2, %v27_v3  ;;  %v229_v16 = vld [vmem:[%s350_s4] ss:$0 sm:$0xff] }
   0x7   :  { %263 = vmatprep.mubr.msk.bf16.mxu0 %vm274_vm1, %v273_v0  ;;  %260 = vmatpush3.bf16.msra.mxu0 %v271_v6  ;;  %v233_v24 = vld [vmem:[%s351_s6] ss:$0 sm:$0xff] }
   0x8   :  { %254 = vmatpush3.bf16.msra.mxu1 %v270_v5  ;;  %261 = vmatprep.subr.bf16.mxu0 %v273_v0 }
   0xb   :  { %262 = vmatpush3.bf16.msra.mxu0 %v272_v15 }
  0xd9   :  { %v78_v8 = vpop.f32.mrb[0].mxu0 }
  0xda   :  { %v79_v9 = vadd.f32 %v227_v7, %v78_v8  ;;  %v249_v10 = vpop.f32.mrb[1].mxu0 }
  0xdb   :  { %v81_v11 = vpop.f32.mrb[2].mxu0 }
  0xdc   :  { %v84_v12 = vmax.f32 %v79_v9, 0.0  ;;  %v250_v13 = vpop.f32.mrb[3].mxu0 }
  0xde   :  { %v85_v14 = vpack.c.bf16 %v84_v12, %v84_v12 }
  0xe0   :  { %256 = vmatmul.mubr.msk.bf16.vlgmr.msra.gmra.mrb[0].mxu1 %vm109_vm3, %v85_v14 }
 0x1b3   :  { %v147_v17 = vpop.f32.mrb[0].mxu1 }
 0x1b4   :  { %v148_v18 = vadd.f32 %v229_v16, %v147_v17  ;;  %v257_v19 = vpop.f32.mrb[1].mxu1 }
 0x1b5   :  { %v150_v20 = vpop.f32.mrb[2].mxu1 }
 0x1b6   :  { %v153_v21 = vmax.f32 %v148_v18, 0.0  ;;  %v258_v22 = vpop.f32.mrb[3].mxu1 }
 0x1b8   :  { %v154_v23 = vpack.c.bf16 %v153_v21, %v153_v21 }
 0x1ba   :  { %264 = vmatmul.mubr.msk.bf16.vlgmr.msra.gmra.mrb[4].mxu0 %vm109_vm3, %v154_v23 }
 0x28d   :  { %v215_v25 = vpop.f32.mrb[4].mxu0 }
 0x28e   :  { %v216_v26 = vadd.f32 %v233_v24, %v215_v25  ;;  %v265_v27 = vpop.f32.mrb[5].mxu0 }
 0x28f   :  { %v218_v28 = vpop.f32.mrb[6].mxu0 }
 0x290   :  { %222 = vst.msk [vmem:[%s352_s7] sm:$0xff] %vm221_vm4, %v216_v26  ;;  %v266_v29 = vpop.f32.mrb[7].mxu0 }

</bundles_post_ra>
